<compile_context>
chip_gen: v5e
topology: v5e:2x2
jax: 0.10.0
libtpu: 0.0.40
codegen_flags: <defaults>
</compile_context>

<pallas_src>
import math

import jax
import jax.numpy as jnp
from jax import lax
from jax.experimental import pallas as pl
from jax.experimental.pallas import tpu as pltpu


_LN_EPS = 1e-5
_GELU_C = math.sqrt(2.0 / math.pi)


# ----------------------------- in-kernel helpers ----------------------------

def _layer_norm(x, gamma, beta):
    mu = jnp.mean(x, axis=-1, keepdims=True)
    xc = x - mu
    var = jnp.mean(xc * xc, axis=-1, keepdims=True)
    return xc * lax.rsqrt(var + _LN_EPS) * gamma + beta


def _gelu(x):
    # tanh approximation (same as jax.nn.gelu(approximate=True)).
    # TODO(synk): PyTorch nn.GELU defaults to the exact erf form (diff ~1e-3).
    return 0.5 * x * (1.0 + jnp.tanh(_GELU_C * (x + 0.044715 * x * x * x)))


# ------------------------------ Pallas kernels ------------------------------

def _token_kernel(x_ref, g_ref, be_ref, wch_ref, bch_ref, wcw_ref, bcw_ref,
                  wmc_ref, n_ref, ch_ref, cw_ref, c_ref, csum_ref):
    """LN1 + compress (both mix directions) + mlp_c on a (TM, C) token tile."""
    n = _layer_norm(x_ref[0], g_ref[...], be_ref[...])
    n_ref[0] = n
    ch_ref[0] = jnp.dot(n, wch_ref[...],
                        preferred_element_type=jnp.float32) + bch_ref[...]
    cw_ref[0] = jnp.dot(n, wcw_ref[...],
                        preferred_element_type=jnp.float32) + bcw_ref[...]
    cv = jnp.dot(n, wmc_ref[...], preferred_element_type=jnp.float32)
    c_ref[0] = cv

    part = jnp.sum(cv, axis=0, keepdims=True)          # (1, C) spatial partial sum

    @pl.when(pl.program_id(1) == 0)
    def _():
        csum_ref[0] = part

    @pl.when(pl.program_id(1) != 0)
    def _():
        csum_ref[0] = csum_ref[0] + part


def _generate_kernel(c2t_ref, wg_ref, bg_ref, o_ref):
    """DynaMixer generate: one matmul over ALL sequences and heads of an image."""
    o_ref[0] = jnp.dot(wg_ref[...], c2t_ref[0],
                       preferred_element_type=jnp.float32) + bg_ref[...]


def _make_mix_kernel(seq, dim, num_head):
    """Softmax + per-head token mixing + out-projection for one image."""
    S = L = seq
    C = dim
    H = num_head
    dc = C // H

    def kernel(n_ref, p_ref, wo_ref, bo_ref, o_ref, psum_ref):
        n3 = n_ref[0]                                   # (S, L, C)
        p_all = p_ref[0]                                # (H*S, L_j, L_i) logits
        parts = []
        for h in range(H):                              # H is small (4-8)
            logits = p_all[h * S:(h + 1) * S]           # (S, L_j, L_i)
            m = jnp.max(logits, axis=-1, keepdims=True)
            e = jnp.exp(logits - m)
            p = e * pl.reciprocal(jnp.sum(e, axis=-1, keepdims=True),
                                  approx=True)          # softmax over i
            xh = n3[:, :, h * dc:(h + 1) * dc]          # (S, L_i, dc)
            yh = jnp.einsum('sji,sid->sjd', p, xh,
                            preferred_element_type=jnp.float32)   # (S, L_j, dc)
            parts.append(yh.reshape(S * L, dc))
        y2 = jnp.concatenate(parts, axis=1)             # (S*L, C)
        out = jnp.dot(y2, wo_ref[...],
                      preferred_element_type=jnp.float32) + bo_ref[...]
        o_ref[0] = out
        psum_ref[0] = jnp.sum(out, axis=0, keepdims=True)   # spatial sum for reweight

    return kernel


def _make_reweight_kernel(seq, dim):
    """(hsum + wsum + csum)/N -> tiny MLP -> 3-way softmax weights."""
    C = dim
    inv_cnt = 1.0 / float(seq * seq)

    def kernel(hs_ref, ws_ref, cs_ref, w1_ref, b1_ref, w2_ref, b2_ref, o_ref):
        am = (hs_ref[0] + ws_ref[0] + cs_ref[0]) * inv_cnt          # (1, C)
        z = _gelu(jnp.dot(am, w1_ref[...],
                          preferred_element_type=jnp.float32) + b1_ref[...])
        z = jnp.dot(z, w2_ref[...],
                    preferred_element_type=jnp.float32) + b2_ref[...]  # (1, 3C)
        a0, a1, a2 = z[:, :C], z[:, C:2 * C], z[:, 2 * C:]
        mx = jnp.maximum(jnp.maximum(a0, a1), a2)
        e0, e1, e2 = jnp.exp(a0 - mx), jnp.exp(a1 - mx), jnp.exp(a2 - mx)
        inv = pl.reciprocal(e0 + e1 + e2, approx=True)
        o_ref[0] = jnp.concatenate([e0 * inv, e1 * inv, e2 * inv], axis=1)

    return kernel


def _make_tail_kernel(dim):
    """(h*a0 + w*a1 + c*a2) -> proj -> +x -> LN2 -> MLP -> +x1, one row tile."""
    C = dim

    def kernel(x_ref, h_ref, w_ref, c_ref, a_ref, wp_ref, bp_ref,
               g2_ref, be2_ref, w1_ref, b1_ref, w2_ref, b2_ref, o_ref):
        xs = x_ref[0]
        a = a_ref[0]                                    # (1, 3C)
        comb = (h_ref[0] * a[:, :C] + w_ref[0] * a[:, C:2 * C]
                + c_ref[0] * a[:, 2 * C:])
        x1 = xs + jnp.dot(comb, wp_ref[...],
                          preferred_element_type=jnp.float32) + bp_ref[...]
        n2 = _layer_norm(x1, g2_ref[...], be2_ref[...])
        hdn = _gelu(jnp.dot(n2, w1_ref[...],
                            preferred_element_type=jnp.float32) + b1_ref[...])
        o_ref[0] = x1 + jnp.dot(hdn, w2_ref[...],
                                preferred_element_type=jnp.float32) + b2_ref[...]

    return kernel


# ------------------------------- glue / wrapper ------------------------------

def _full_spec(shape):
    n = len(shape)
    return pl.BlockSpec(shape, lambda *_: (0,) * n)


def _prep_params(p, *, dim, seq, num_head, reduced_dim):
    C, S, H, Dr = dim, seq, num_head, reduced_dim
    perm_3 = jnp.arange(3 * C).reshape(C, 3).T.reshape(-1)   # k-major reweight cols

    def mix(q):
        return dict(
            wc=q["compress_w"].T,                   # (C, H*Dr), cols (h, r)
            bc=q["compress_b"].reshape(1, H * Dr),
            wg=q["generate_w"],                     # (L*L, L*Dr), rows (i, j)
            bg=q["generate_b"].reshape(S * S, 1),
            wo=q["out_w"].T,
            bo=q["out_b"].reshape(1, C),
        )

    return dict(
        g1=p["ln1_g"].reshape(1, C), be1=p["ln1_b"].reshape(1, C),
        g2=p["ln2_g"].reshape(1, C), be2=p["ln2_b"].reshape(1, C),
        mix_h=mix(p["mix_h"]), mix_w=mix(p["mix_w"]),
        wmc=p["mlp_c_w"].T,
        rw1=p["rw1_w"].T, rb1=p["rw1_b"].reshape(1, -1),
        rw2=p["rw2_w"].T[:, perm_3], rb2=p["rw2_b"][perm_3].reshape(1, 3 * C),
        wp=p["proj_w"].T, bp=p["proj_b"].reshape(1, C),
        mw1=p["fc1_w"].T, mb1=p["fc1_b"].reshape(1, -1),
        mw2=p["fc2_w"].T, mb2=p["fc2_b"].reshape(1, C),
    )


def vision_block_pallas(x, params, *, num_head, reduced_dim):
    B, S1, S2, C = x.shape
    assert S1 == S2, "DynaMixerBlock requires a square spatial resolution"
    assert C % num_head == 0
    S = L = S1
    assert S % 8 == 0, "resolution must be 8-aligned for in-kernel reshapes"
    H, Dr = num_head, reduced_dim
    M = S * S
    f32 = jnp.float32
    kp = _prep_params(params, dim=C, seq=S, num_head=H, reduced_dim=Dr)
    mh, mw = kp["mix_h"], kp["mix_w"]

    TM = M
    for cand in (512, 256, 128, 64, 32, 16, 8):
        if M % cand == 0:
            TM = cand
            break
    T = M // TM

    par1 = pltpu.CompilerParams(dimension_semantics=("parallel",))
    par2p = pltpu.CompilerParams(dimension_semantics=("parallel", "parallel"))
    par2a = pltpu.CompilerParams(dimension_semantics=("parallel", "arbitrary"))

    x3 = x.reshape(B, M, C)
    tok_blk = pl.BlockSpec((1, TM, C), lambda b, t: (b, t, 0))
    cmp_blk = pl.BlockSpec((1, TM, H * Dr), lambda b, t: (b, t, 0))
    acc_blk = pl.BlockSpec((1, 1, C), lambda b, t: (b, 0, 0))

    # ---- Kernel A: LN1 + compress(h,w) + mlp_c + per-image mlp_c spatial sum ----
    n3, compH, compW, c3, csum = pl.pallas_call(
        _token_kernel,
        out_shape=(jax.ShapeDtypeStruct((B, M, C), f32),
                   jax.ShapeDtypeStruct((B, M, H * Dr), f32),
                   jax.ShapeDtypeStruct((B, M, H * Dr), f32),
                   jax.ShapeDtypeStruct((B, M, C), f32),
                   jax.ShapeDtypeStruct((B, 1, C), f32)),
        grid=(B, T),
        in_specs=[tok_blk,
                  _full_spec((1, C)), _full_spec((1, C)),
                  _full_spec(mh["wc"].shape), _full_spec(mh["bc"].shape),
                  _full_spec(mw["wc"].shape), _full_spec(mw["bc"].shape),
                  _full_spec(kp["wmc"].shape)],
        out_specs=(tok_blk, cmp_blk, cmp_blk, tok_blk, acc_blk),
        compiler_params=par2a,
    )(x3, kp["g1"], kp["be1"], mh["wc"], mh["bc"], mw["wc"], mw["bc"], kp["wmc"])

    # ---- layout glue (tiny compress tensors, plain XLA) ----
    ch5 = compH.reshape(B, S, S, H, Dr)                       # (b, i, j, h, r)
    cw5 = compW.reshape(B, S, S, H, Dr)
    # rows (l, r), cols (other-axis, head)
    c2t_h = ch5.transpose(0, 1, 4, 2, 3).reshape(B, L * Dr, S * H)   # l=i, s=j
    c2t_w = cw5.transpose(0, 2, 4, 1, 3).reshape(B, L * Dr, S * H)   # l=j, s=i

    # ---- Kernel B1: generate logits, one matmul per image per direction ----
    def run_generate(c2t, q):
        return pl.pallas_call(
            _generate_kernel,
            out_shape=jax.ShapeDtypeStruct((B, L * L, S * H), f32),
            grid=(B,),
            in_specs=[pl.BlockSpec((1, L * Dr, S * H), lambda b: (b, 0, 0)),
                      _full_spec(q["wg"].shape), _full_spec(q["bg"].shape)],
            out_specs=pl.BlockSpec((1, L * L, S * H), lambda b: (b, 0, 0)),
            compiler_params=par1,
        )(c2t, q["wg"], q["bg"])

    g_h = run_generate(c2t_h, mh)
    g_w = run_generate(c2t_w, mw)

    def relayout_probs(g):
        # (b, i*L+j, s*H+h) -> (b, h*S+s, j, i): per-(head, sequence) matrices.
        return (g.reshape(B, L, L, S, H)
                 .transpose(0, 4, 3, 2, 1)
                 .reshape(B, H * S, L, L))

    p_h = relayout_probs(g_h)
    p_w = relayout_probs(g_w)

    n4 = n3.reshape(B, S, S, C)                     # (b, i, j, c)
    n4_t = jnp.transpose(n4, (0, 2, 1, 3))          # (b, j, i, c): contiguous H-seqs

    # ---- Kernel B2: softmax + token mixing + out-proj (+ spatial sums) ----
    def run_mix(n_dir, p_dir, q):
        return pl.pallas_call(
            _make_mix_kernel(S, C, H),
            out_shape=(jax.ShapeDtypeStruct((B, M, C), f32),
                       jax.ShapeDtypeStruct((B, 1, C), f32)),
            grid=(B,),
            in_specs=[pl.BlockSpec((1, S, L, C), lambda b: (b, 0, 0, 0)),
                      pl.BlockSpec((1, H * S, L, L), lambda b: (b, 0, 0, 0)),
                      _full_spec(q["wo"].shape), _full_spec(q["bo"].shape)],
            out_specs=(pl.BlockSpec((1, M, C), lambda b: (b, 0, 0)),
                       pl.BlockSpec((1, 1, C), lambda b: (b, 0, 0))),
            compiler_params=par1,
        )(n_dir, p_dir, q["wo"], q["bo"])

    h_mix, hsum = run_mix(n4_t, p_h, mh)            # token order (j, i)
    w_mix, wsum = run_mix(n4, p_w, mw)              # token order (i, j)
    h3 = h_mix.reshape(B, S, S, C).transpose(0, 2, 1, 3).reshape(B, M, C)

    # ---- Kernel C: reweight MLP + 3-way softmax (only consumes (B,1,C) sums) ----
    sum_spec = pl.BlockSpec((1, 1, C), lambda b: (b, 0, 0))
    a3 = pl.pallas_call(
        _make_reweight_kernel(S, C),
        out_shape=jax.ShapeDtypeStruct((B, 1, 3 * C), f32),
        grid=(B,),
        in_specs=[sum_spec, sum_spec, sum_spec,
                  _full_spec(kp["rw1"].shape), _full_spec(kp["rb1"].shape),
                  _full_spec(kp["rw2"].shape), _full_spec(kp["rb2"].shape)],
        out_specs=pl.BlockSpec((1, 1, 3 * C), lambda b: (b, 0, 0)),
        compiler_params=par1,
    )(hsum, wsum, csum, kp["rw1"], kp["rb1"], kp["rw2"], kp["rb2"])

    # ---- Kernel D: fused combine + proj + residual + LN2 + MLP + residual ----
    hidden = kp["mw1"].shape[1]
    out3 = pl.pallas_call(
        _make_tail_kernel(C),
        out_shape=jax.ShapeDtypeStruct((B, M, C), f32),
        grid=(B, T),
        in_specs=[tok_blk, tok_blk, tok_blk, tok_blk,
                  pl.BlockSpec((1, 1, 3 * C), lambda b, t: (b, 0, 0)),
                  _full_spec(kp["wp"].shape), _full_spec((1, C)),
                  _full_spec((1, C)), _full_spec((1, C)),
                  _full_spec(kp["mw1"].shape), _full_spec((1, hidden)),
                  _full_spec(kp["mw2"].shape), _full_spec((1, C))],
        out_specs=tok_blk,
        compiler_params=par2p,
    )(x3, h3, w_mix, c3, a3, kp["wp"], kp["bp"],
      kp["g2"], kp["be2"], kp["mw1"], kp["mb1"], kp["mw2"], kp["mb2"])

    return out3.reshape(B, S, S, C)


# ---------------------------- pure-JAX reference -----------------------------

def _ref_dynamixer_op(xseq, q, num_head, reduced_dim):
    Bs, L, C = xseq.shape
    H, Dr = num_head, reduced_dim
    w = xseq @ q["compress_w"].T + q["compress_b"]
    w = w.reshape(Bs, L, H, Dr).transpose(0, 2, 1, 3).reshape(Bs, H, L * Dr)
    w = w @ q["generate_w"].T + q["generate_b"]
    w = w.reshape(Bs, H, L, L)
    w = jax.nn.softmax(w, axis=-2)
    xh = xseq.reshape(Bs, L, H, C // H).transpose(0, 2, 3, 1)
    xh = jnp.matmul(xh, w)
    xh = xh.transpose(0, 3, 1, 2).reshape(Bs, L, C)
    return xh @ q["out_w"].T + q["out_b"]


def vision_block_ref(x, p, *, num_head, reduced_dim):
    B, S, _, C = x.shape

    def ln(v, g, b):
        mu = v.mean(-1, keepdims=True)
        var = ((v - mu) ** 2).mean(-1, keepdims=True)
        return (v - mu) / jnp.sqrt(var + _LN_EPS) * g + b

    n1 = ln(x, p["ln1_g"], p["ln1_b"])
    h = _ref_dynamixer_op(n1.transpose(0, 2, 1, 3).reshape(-1, S, C),
                          p["mix_h"], num_head, reduced_dim)
    h = h.reshape(B, S, S, C).transpose(0, 2, 1, 3)
    w = _ref_dynamixer_op(n1.reshape(-1, S, C), p["mix_w"],
                          num_head, reduced_dim).reshape(B, S, S, C)
    c = n1 @ p["mlp_c_w"].T
    a = (h + w + c).transpose(0, 3, 1, 2).reshape(B, C, -1).mean(-1)
    a = jax.nn.gelu(a @ p["rw1_w"].T + p["rw1_b"]) @ p["rw2_w"].T + p["rw2_b"]
    a = jax.nn.softmax(a.reshape(B, C, 3).transpose(2, 0, 1), axis=0)
    a = a[:, :, None, None, :]
    attn = (h * a[0] + w * a[1] + c * a[2]) @ p["proj_w"].T + p["proj_b"]
    x = x + attn
    n2 = ln(x, p["ln2_g"], p["ln2_b"])
    m = jax.nn.gelu(n2 @ p["fc1_w"].T + p["fc1_b"]) @ p["fc2_w"].T + p["fc2_b"]
    return x + m


# ---------------------------------- params -----------------------------------

def init_params(key, *, dim, resolution, num_head, reduced_dim, mlp_ratio=4.0):
    C, S, H, Dr = dim, resolution, num_head, reduced_dim
    hidden = int(C * mlp_ratio)
    c4 = C // 4
    keys = iter(jax.random.split(key, 32))

    def lin(fan_in, fan_out, bias=True):
        bound = 1.0 / math.sqrt(fan_in)
        w = jax.random.uniform(next(keys), (fan_out, fan_in), jnp.float32,
                               -bound, bound)
        if not bias:
            return w
        b = jax.random.uniform(next(keys), (fan_out,), jnp.float32,
                               -bound, bound)
        return w, b

    def mix_op():
        ow, ob = lin(C, C)
        cw, cb = lin(C, H * Dr)
        gw, gb = lin(S * Dr, S * S)
        return dict(out_w=ow, out_b=ob, compress_w=cw, compress_b=cb,
                    generate_w=gw, generate_b=gb)

    rw1_w, rw1_b = lin(C, c4)
    rw2_w, rw2_b = lin(c4, 3 * C)
    proj_w, proj_b = lin(C, C)
    fc1_w, fc1_b = lin(C, hidden)
    fc2_w, fc2_b = lin(hidden, C)
    return dict(
        ln1_g=jnp.ones((C,), jnp.float32), ln1_b=jnp.zeros((C,), jnp.float32),
        ln2_g=jnp.ones((C,), jnp.float32), ln2_b=jnp.zeros((C,), jnp.float32),
        mix_h=mix_op(), mix_w=mix_op(),
        mlp_c_w=lin(C, C, bias=False),
        rw1_w=rw1_w, rw1_b=rw1_b, rw2_w=rw2_w, rw2_b=rw2_b,
        proj_w=proj_w, proj_b=proj_b,
        fc1_w=fc1_w, fc1_b=fc1_b, fc2_w=fc2_w, fc2_b=fc2_b,
    )


# ----------------------------------- main -------------------------------------

if __name__ == "__main__":
    B, S, C = 2, 8, 32              # batch, spatial resolution (S x S), channels
    num_head, reduced_dim = 4, 2

    key = jax.random.PRNGKey(0)
    kx, kparam = jax.random.split(key)
    x = jax.random.normal(kx, (B, S, S, C), dtype=jnp.float32)
    params = init_params(kparam, dim=C, resolution=S, num_head=num_head,
                         reduced_dim=reduced_dim)

    out = vision_block_pallas(x, params, num_head=num_head,
                              reduced_dim=reduced_dim)
    out = jax.block_until_ready(out)

    ref = jax.block_until_ready(
        vision_block_ref(x, params, num_head=num_head,
                         reduced_dim=reduced_dim))
    assert out.shape == (B, S, S, C)
    max_err = float(jnp.max(jnp.abs(out - ref)))
    if max_err > 2e-2 or not bool(jnp.all(jnp.isfinite(out))):
        raise AssertionError(f"mismatch vs reference: max abs err = {max_err}")

    print("KERNEL_OK")
</pallas_src>

<mosaic_0001>
module attributes {stable_mosaic.version = 11 : i64} {
  func.func @_token_kernel(%arg0: i32, %arg1: i32, %arg2: memref<1x64x32xf32, #tpu.memory_space<vmem>>, %arg3: memref<1x32xf32, #tpu.memory_space<vmem>>, %arg4: memref<1x32xf32, #tpu.memory_space<vmem>>, %arg5: memref<32x8xf32, #tpu.memory_space<vmem>>, %arg6: memref<1x8xf32, #tpu.memory_space<vmem>>, %arg7: memref<32x8xf32, #tpu.memory_space<vmem>>, %arg8: memref<1x8xf32, #tpu.memory_space<vmem>>, %arg9: memref<32x32xf32, #tpu.memory_space<vmem>>, %arg10: memref<1x64x32xf32, #tpu.memory_space<vmem>>, %arg11: memref<1x64x8xf32, #tpu.memory_space<vmem>>, %arg12: memref<1x64x8xf32, #tpu.memory_space<vmem>>, %arg13: memref<1x64x32xf32, #tpu.memory_space<vmem>>, %arg14: memref<1x1x32xf32, #tpu.memory_space<vmem>>) attributes {dimension_semantics = [#tpu.dimension_semantics<parallel>, #tpu.dimension_semantics<arbitrary>], iteration_bounds = array<i64: 2, 1>, scalar_prefetch = 0 : i64, scratch_operands = 0 : i64, tpu.core_type = #tpu.core_type<tc>, window_params = [{transform_indices = @transform_0, window_bounds = array<i64: 1, 64, 32>}, {pipeline_mode = #tpu.pipeline_mode<synchronous>, transform_indices = @transform_1, window_bounds = array<i64: 1, 32>}, {pipeline_mode = #tpu.pipeline_mode<synchronous>, transform_indices = @transform_2, window_bounds = array<i64: 1, 32>}, {pipeline_mode = #tpu.pipeline_mode<synchronous>, transform_indices = @transform_3, window_bounds = array<i64: 32, 8>}, {pipeline_mode = #tpu.pipeline_mode<synchronous>, transform_indices = @transform_4, window_bounds = array<i64: 1, 8>}, {pipeline_mode = #tpu.pipeline_mode<synchronous>, transform_indices = @transform_5, window_bounds = array<i64: 32, 8>}, {pipeline_mode = #tpu.pipeline_mode<synchronous>, transform_indices = @transform_6, window_bounds = array<i64: 1, 8>}, {pipeline_mode = #tpu.pipeline_mode<synchronous>, transform_indices = @transform_7, window_bounds = array<i64: 32, 32>}, {transform_indices = @transform_8, window_bounds = array<i64: 1, 64, 32>}, {transform_indices = @transform_9, window_bounds = array<i64: 1, 64, 8>}, {transform_indices = @transform_10, window_bounds = array<i64: 1, 64, 8>}, {transform_indices = @transform_11, window_bounds = array<i64: 1, 64, 32>}, {transform_indices = @transform_12, window_bounds = array<i64: 1, 1, 32>}]} {
    %c0 = arith.constant 0 : index
    %c0_0 = arith.constant 0 : index
    %c0_1 = arith.constant 0 : index
    %0 = vector.load %arg2[%c0, %c0_0, %c0_1] : memref<1x64x32xf32, #tpu.memory_space<vmem>>, vector<1x64x32xf32>
    %1 = vector.shape_cast %0 : vector<1x64x32xf32> to vector<64x32xf32>
    %c0_2 = arith.constant 0 : index
    %c0_3 = arith.constant 0 : index
    %2 = vector.load %arg3[%c0_2, %c0_3] : memref<1x32xf32, #tpu.memory_space<vmem>>, vector<1x32xf32>
    %c0_4 = arith.constant 0 : index
    %c0_5 = arith.constant 0 : index
    %3 = vector.load %arg4[%c0_4, %c0_5] : memref<1x32xf32, #tpu.memory_space<vmem>>, vector<1x32xf32>
    %cst = arith.constant dense<0.000000e+00> : vector<64xf32>
    %4 = vector.multi_reduction <add>, %1, %cst [1] : vector<64x32xf32> to vector<64xf32>
    %5 = vector.shape_cast %4 : vector<64xf32> to vector<64x1xf32>
    %cst_6 = arith.constant 3.200000e+01 : f32
    %6 = vector.broadcast %cst_6 : f32 to vector<64x1xf32>
    %7 = arith.divf %5, %6 : vector<64x1xf32>
    %8 = vector.broadcast %7 : vector<64x1xf32> to vector<64x32xf32>
    %9 = arith.subf %1, %8 : vector<64x32xf32>
    %10 = arith.mulf %9, %9 : vector<64x32xf32>
    %cst_7 = arith.constant dense<0.000000e+00> : vector<64xf32>
    %11 = vector.multi_reduction <add>, %10, %cst_7 [1] : vector<64x32xf32> to vector<64xf32>
    %12 = vector.shape_cast %11 : vector<64xf32> to vector<64x1xf32>
    %cst_8 = arith.constant 3.200000e+01 : f32
    %13 = vector.broadcast %cst_8 : f32 to vector<64x1xf32>
    %14 = arith.divf %12, %13 : vector<64x1xf32>
    %cst_9 = arith.constant 9.99999974E-6 : f32
    %15 = vector.broadcast %cst_9 : f32 to vector<64x1xf32>
    %16 = arith.addf %14, %15 : vector<64x1xf32>
    %17 = math.rsqrt %16 : vector<64x1xf32>
    %18 = vector.broadcast %17 : vector<64x1xf32> to vector<64x32xf32>
    %19 = arith.mulf %9, %18 : vector<64x32xf32>
    %20 = vector.broadcast %2 : vector<1x32xf32> to vector<64x32xf32>
    %21 = arith.mulf %19, %20 : vector<64x32xf32>
    %22 = vector.broadcast %3 : vector<1x32xf32> to vector<64x32xf32>
    %23 = arith.addf %21, %22 : vector<64x32xf32>
    %c0_10 = arith.constant 0 : index
    %c0_11 = arith.constant 0 : index
    %c0_12 = arith.constant 0 : index
    %24 = vector.load %arg10[%c0_10, %c0_11, %c0_12] : memref<1x64x32xf32, #tpu.memory_space<vmem>>, vector<1x64x32xf32>
    %25 = vector.shape_cast %24 : vector<1x64x32xf32> to vector<64x32xf32>
    %26 = vector.shape_cast %23 : vector<64x32xf32> to vector<1x64x32xf32>
    tpu.vector_store %arg10[%c0_10, %c0_11, %c0_12], %26 {strides = array<i32>} : memref<1x64x32xf32, #tpu.memory_space<vmem>>, vector<1x64x32xf32>,
    %c0_13 = arith.constant 0 : index
    %c0_14 = arith.constant 0 : index
    %27 = vector.load %arg5[%c0_13, %c0_14] : memref<32x8xf32, #tpu.memory_space<vmem>>, vector<32x8xf32>
    %cst_15 = arith.constant dense<0.000000e+00> : vector<64x8xf32>
    %28 = tpu.matmul %23, %27, %cst_15 {dimension_numbers = #tpu.dot_dimension_numbers<[1], [0], [0], [1], [0, 0, 1, 1], [], []>} : vector<64x32xf32>, vector<32x8xf32>, vector<64x8xf32> -> vector<64x8xf32>
    %c0_16 = arith.constant 0 : index
    %c0_17 = arith.constant 0 : index
    %29 = vector.load %arg6[%c0_16, %c0_17] : memref<1x8xf32, #tpu.memory_space<vmem>>, vector<1x8xf32>
    %30 = vector.broadcast %29 : vector<1x8xf32> to vector<64x8xf32>
    %31 = arith.addf %28, %30 : vector<64x8xf32>
    %c0_18 = arith.constant 0 : index
    %c0_19 = arith.constant 0 : index
    %c0_20 = arith.constant 0 : index
    %32 = vector.load %arg11[%c0_18, %c0_19, %c0_20] : memref<1x64x8xf32, #tpu.memory_space<vmem>>, vector<1x64x8xf32>
    %33 = vector.shape_cast %32 : vector<1x64x8xf32> to vector<64x8xf32>
    %34 = vector.shape_cast %31 : vector<64x8xf32> to vector<1x64x8xf32>
    tpu.vector_store %arg11[%c0_18, %c0_19, %c0_20], %34 {strides = array<i32>} : memref<1x64x8xf32, #tpu.memory_space<vmem>>, vector<1x64x8xf32>,
    %c0_21 = arith.constant 0 : index
    %c0_22 = arith.constant 0 : index
    %35 = vector.load %arg7[%c0_21, %c0_22] : memref<32x8xf32, #tpu.memory_space<vmem>>, vector<32x8xf32>
    %cst_23 = arith.constant dense<0.000000e+00> : vector<64x8xf32>
    %36 = tpu.matmul %23, %35, %cst_23 {dimension_numbers = #tpu.dot_dimension_numbers<[1], [0], [0], [1], [0, 0, 1, 1], [], []>} : vector<64x32xf32>, vector<32x8xf32>, vector<64x8xf32> -> vector<64x8xf32>
    %c0_24 = arith.constant 0 : index
    %c0_25 = arith.constant 0 : index
    %37 = vector.load %arg8[%c0_24, %c0_25] : memref<1x8xf32, #tpu.memory_space<vmem>>, vector<1x8xf32>
    %38 = vector.broadcast %37 : vector<1x8xf32> to vector<64x8xf32>
    %39 = arith.addf %36, %38 : vector<64x8xf32>
    %c0_26 = arith.constant 0 : index
    %c0_27 = arith.constant 0 : index
    %c0_28 = arith.constant 0 : index
    %40 = vector.load %arg12[%c0_26, %c0_27, %c0_28] : memref<1x64x8xf32, #tpu.memory_space<vmem>>, vector<1x64x8xf32>
    %41 = vector.shape_cast %40 : vector<1x64x8xf32> to vector<64x8xf32>
    %42 = vector.shape_cast %39 : vector<64x8xf32> to vector<1x64x8xf32>
    tpu.vector_store %arg12[%c0_26, %c0_27, %c0_28], %42 {strides = array<i32>} : memref<1x64x8xf32, #tpu.memory_space<vmem>>, vector<1x64x8xf32>,
    %c0_29 = arith.constant 0 : index
    %c0_30 = arith.constant 0 : index
    %43 = vector.load %arg9[%c0_29, %c0_30] : memref<32x32xf32, #tpu.memory_space<vmem>>, vector<32x32xf32>
    %cst_31 = arith.constant dense<0.000000e+00> : vector<64x32xf32>
    %44 = tpu.matmul %23, %43, %cst_31 {dimension_numbers = #tpu.dot_dimension_numbers<[1], [0], [0], [1], [0, 0, 1, 1], [], []>} : vector<64x32xf32>, vector<32x32xf32>, vector<64x32xf32> -> vector<64x32xf32>
    %c0_32 = arith.constant 0 : index
    %c0_33 = arith.constant 0 : index
    %c0_34 = arith.constant 0 : index
    %45 = vector.load %arg13[%c0_32, %c0_33, %c0_34] : memref<1x64x32xf32, #tpu.memory_space<vmem>>, vector<1x64x32xf32>
    %46 = vector.shape_cast %45 : vector<1x64x32xf32> to vector<64x32xf32>
    %47 = vector.shape_cast %44 : vector<64x32xf32> to vector<1x64x32xf32>
    tpu.vector_store %arg13[%c0_32, %c0_33, %c0_34], %47 {strides = array<i32>} : memref<1x64x32xf32, #tpu.memory_space<vmem>>, vector<1x64x32xf32>,
    %cst_35 = arith.constant dense<0.000000e+00> : vector<32xf32>
    %48 = vector.multi_reduction <add>, %44, %cst_35 [0] : vector<64x32xf32> to vector<32xf32>
    %49 = vector.shape_cast %48 : vector<32xf32> to vector<1x32xf32>
    %c0_i32 = arith.constant 0 : i32
    %50 = arith.cmpi eq, %arg1, %c0_i32 : i32
    %51 = arith.extui %50 : i1 to i32
    %c0_i32_36 = arith.constant 0 : i32
    %52 = arith.cmpi ne, %51, %c0_i32_36 : i32
    scf.if %52 {
      %c0_39 = arith.constant 0 : index
      %c0_40 = arith.constant 0 : index
      %c0_41 = arith.constant 0 : index
      %56 = vector.load %arg14[%c0_39, %c0_40, %c0_41] : memref<1x1x32xf32, #tpu.memory_space<vmem>>, vector<1x1x32xf32>
      %57 = vector.shape_cast %56 : vector<1x1x32xf32> to vector<1x32xf32>
      %58 = vector.shape_cast %49 : vector<1x32xf32> to vector<1x1x32xf32>
      tpu.vector_store %arg14[%c0_39, %c0_40, %c0_41], %58 {strides = array<i32>} : memref<1x1x32xf32, #tpu.memory_space<vmem>>, vector<1x1x32xf32>,
    } else {
    }
    %c0_i32_37 = arith.constant 0 : i32
    %53 = arith.cmpi ne, %arg1, %c0_i32_37 : i32
    %54 = arith.extui %53 : i1 to i32
    %c0_i32_38 = arith.constant 0 : i32
    %55 = arith.cmpi ne, %54, %c0_i32_38 : i32
    scf.if %55 {
      %c0_39 = arith.constant 0 : index
      %c0_40 = arith.constant 0 : index
      %c0_41 = arith.constant 0 : index
      %56 = vector.load %arg14[%c0_39, %c0_40, %c0_41] : memref<1x1x32xf32, #tpu.memory_space<vmem>>, vector<1x1x32xf32>
      %57 = vector.shape_cast %56 : vector<1x1x32xf32> to vector<1x32xf32>
      %58 = arith.addf %57, %49 : vector<1x32xf32>
      %c0_42 = arith.constant 0 : index
      %c0_43 = arith.constant 0 : index
      %c0_44 = arith.constant 0 : index
      %59 = vector.load %arg14[%c0_42, %c0_43, %c0_44] : memref<1x1x32xf32, #tpu.memory_space<vmem>>, vector<1x1x32xf32>
      %60 = vector.shape_cast %59 : vector<1x1x32xf32> to vector<1x32xf32>
      %61 = vector.shape_cast %58 : vector<1x32xf32> to vector<1x1x32xf32>
      tpu.vector_store %arg14[%c0_42, %c0_43, %c0_44], %61 {strides = array<i32>} : memref<1x1x32xf32, #tpu.memory_space<vmem>>, vector<1x1x32xf32>,
    } else {
    }
    return
  }
  func.func @transform_0(%arg0: i32, %arg1: i32) -> (i32, i32, i32) {
    %c0_i32 = arith.constant 0 : i32
    %c0_i32_0 = arith.constant 0 : i32
    return %arg0, %arg1, %c0_i32 : i32, i32, i32
  }
  func.func @transform_1(%arg0: i32, %arg1: i32) -> (i32, i32) {
    %c0_i32 = arith.constant 0 : i32
    %c0_i32_0 = arith.constant 0 : i32
    %c0_i32_1 = arith.constant 0 : i32
    return %c0_i32, %c0_i32_0 : i32, i32
  }
  func.func @transform_2(%arg0: i32, %arg1: i32) -> (i32, i32) {
    %c0_i32 = arith.constant 0 : i32
    %c0_i32_0 = arith.constant 0 : i32
    %c0_i32_1 = arith.constant 0 : i32
    return %c0_i32, %c0_i32_0 : i32, i32
  }
  func.func @transform_3(%arg0: i32, %arg1: i32) -> (i32, i32) {
    %c0_i32 = arith.constant 0 : i32
    %c0_i32_0 = arith.constant 0 : i32
    %c0_i32_1 = arith.constant 0 : i32
    return %c0_i32, %c0_i32_0 : i32, i32
  }
  func.func @transform_4(%arg0: i32, %arg1: i32) -> (i32, i32) {
    %c0_i32 = arith.constant 0 : i32
    %c0_i32_0 = arith.constant 0 : i32
    %c0_i32_1 = arith.constant 0 : i32
    return %c0_i32, %c0_i32_0 : i32, i32
  }
  func.func @transform_5(%arg0: i32, %arg1: i32) -> (i32, i32) {
    %c0_i32 = arith.constant 0 : i32
    %c0_i32_0 = arith.constant 0 : i32
    %c0_i32_1 = arith.constant 0 : i32
    return %c0_i32, %c0_i32_0 : i32, i32
  }
  func.func @transform_6(%arg0: i32, %arg1: i32) -> (i32, i32) {
    %c0_i32 = arith.constant 0 : i32
    %c0_i32_0 = arith.constant 0 : i32
    %c0_i32_1 = arith.constant 0 : i32
    return %c0_i32, %c0_i32_0 : i32, i32
  }
  func.func @transform_7(%arg0: i32, %arg1: i32) -> (i32, i32) {
    %c0_i32 = arith.constant 0 : i32
    %c0_i32_0 = arith.constant 0 : i32
    %c0_i32_1 = arith.constant 0 : i32
    return %c0_i32, %c0_i32_0 : i32, i32
  }
  func.func @transform_8(%arg0: i32, %arg1: i32) -> (i32, i32, i32) {
    %c0_i32 = arith.constant 0 : i32
    %c0_i32_0 = arith.constant 0 : i32
    return %arg0, %arg1, %c0_i32 : i32, i32, i32
  }
  func.func @transform_9(%arg0: i32, %arg1: i32) -> (i32, i32, i32) {
    %c0_i32 = arith.constant 0 : i32
    %c0_i32_0 = arith.constant 0 : i32
    return %arg0, %arg1, %c0_i32 : i32, i32, i32
  }
  func.func @transform_10(%arg0: i32, %arg1: i32) -> (i32, i32, i32) {
    %c0_i32 = arith.constant 0 : i32
    %c0_i32_0 = arith.constant 0 : i32
    return %arg0, %arg1, %c0_i32 : i32, i32, i32
  }
  func.func @transform_11(%arg0: i32, %arg1: i32) -> (i32, i32, i32) {
    %c0_i32 = arith.constant 0 : i32
    %c0_i32_0 = arith.constant 0 : i32
    return %arg0, %arg1, %c0_i32 : i32, i32, i32
  }
  func.func @transform_12(%arg0: i32, %arg1: i32) -> (i32, i32, i32) {
    %c0_i32 = arith.constant 0 : i32
    %c0_i32_0 = arith.constant 0 : i32
    %c0_i32_1 = arith.constant 0 : i32
    return %arg0, %c0_i32, %c0_i32_0 : i32, i32, i32
  }
}

</mosaic_0001>

<bundles_post_ra>
// kernel: tpu_custom_call.1
= control target key start
LH: loop header
LB: loop body
LE: loop exit
PB: predicated region body
PF: predicated region fallthrough
CT: control target
= control target key end

     0   :  { %s1987_s0 = inlined_call_operand.vmem [shape: f32[2,64,32], index: 0, kind: input, shape index: {}]   ;;  %s1988_s1 = inlined_call_operand.vmem [shape: f32[1,32], index: 1, kind: input, shape index: {}]   ;;  %s1989_s2 = inlined_call_operand.vmem [shape: f32[1,32], index: 2, kind: input, shape index: {}]   ;;  %s1990_s3 = inlined_call_operand.vmem [shape: f32[32,8], index: 3, kind: input, shape index: {}]   ;;  %s1991_s4 = inlined_call_operand.vmem [shape: f32[1,8], index: 4, kind: input, shape index: {}]   ;;  %s1992_s5 = inlined_call_operand.vmem [shape: f32[32,8], index: 5, kind: input, shape index: {}]   ;;  %s1993_s6 = inlined_call_operand.vmem [shape: f32[1,8], index: 6, kind: input, shape index: {}]   ;;  %s1994_s7 = inlined_call_operand.vmem [shape: f32[32,32], index: 7, kind: input, shape index: {}]   ;;  %s1995_s8 = inlined_call_operand.vmem [shape: f32[2,64,32], index: 8, kind: output, shape index: {0}]   ;;  %s1996_s9 = inlined_call_operand.vmem [shape: f32[2,64,8], index: 9, kind: output, shape index: {1}]   ;;  %s1997_s10 = inlined_call_operand.vmem [shape: f32[2,64,8], index: 10, kind: output, shape index: {2}]   ;;  %s1998_s11 = inlined_call_operand.vmem [shape: f32[2,64,32], index: 11, kind: output, shape index: {3}]   ;;  %s1999_s12 = inlined_call_operand.hbm [shape: f32[2,1,32], index: 12, kind: output, shape index: {4}]  }
   0x1   :  { %2001 = sst [smem:[#allocation6_spill]] %s1987_s0 }
   0x2   :  { %2002 = sst [smem:[#allocation7_spill]] %s1988_s1 }
   0x3   :  { %18 = vsyncpa [#allocation3], 0 }
   0x4   :  { %20 = vsyncpa [#allocation3 + $0x1], 0  ;;  %s1547_s21 = smov 0   ;;  %s1549_s22 = smov 0  }
   0x5   :  { %s1551_s23 = smov 0   ;;  %s1553_s24 = smov 0  }
   0x6   :  { %s1555_s25 = smov 0   ;;  %s1557_s26 = smov 0  }
   0x7 LB: > { %s1265_s27 = sadd.s32 4294967295, %s1479_s26   ;;  %s1266_s28 = sadd.s32 4294967294, %s1479_s26   ;;  %s1479_s26 = sphi %s1557_s26, %s26_s26   ;;  %s1475_s25 = sphi %s1555_s25, %s2017_s25   ;;  %s1471_s24 = sphi %s1553_s24, %s2016_s24   ;;  %s1467_s23 = sphi %s1551_s23, %s2015_s23   ;;  %s1463_s22 = sphi %s1549_s22, %s2014_s22   ;;  %s1459_s21 = sphi %s1547_s21, %s2013_s21  }
   0x8   : > { %s38_s29 = sadd.s32 1, %s1475_s25  ;;  %s332_s30 = sadd.s32 1, %s1467_s23 }
   0x9   : > { %p40_p0 = scmp.ge.s32.totalorder %s38_s29, 2  ;;  %p342_p1 = scmp.ne.s32.totalorder %s1467_s23, %s1463_s22 }
   0xa   : > { %p343_p2 = scmp.eq.s32.totalorder %s1265_s27, 1  ;;  %p348_p3 = scmp.ne.s32.totalorder %s1463_s22, %s1459_s21 }
   0xb   : > { %s2019_s29 = smov (%p40_p0, %s38_s29), 0  ;;  %p349_p5 = scmp.eq.s32.totalorder %s1266_s28, 1 }
   0xc   : > { %2003 = sst [smem:[#allocation5_spill]] %s2019_s29  ;;  %p1587_p4 = por %p343_p2, %p342_p1 }
   0xd   : > { %s329_s14 = ssub.s32 %s1475_s25, %s2019_s29  ;;  %p1269_p6 = scmp.ge.s32.totalorder %s1479_s26, 1 }
   0xe   : > { %p330_p7 = scmp.eq.s32.totalorder %s329_s14, 0  ;;  %p1594_p8 = por %p349_p5, %p348_p3 }
   0xf   : > { %p401_p9 = scmp.lt.s32.totalorder %s1479_s26, 3 }
  0x10   : > { %s1600_s16 = scalar_select %p330_p7, %s1467_s23, %s332_s30  }
  0x11   : > { %p402_p10 = pnand %p1269_p6, %p401_p9 }
  0x12   : > { %p483_p11 = scmp.lt.s32.totalorder (!%p402_p10), %s1471_s24, 1  ;;  %s2006_s0 = sld [smem:[#allocation6_spill]] (!%p402_p10) }
  0x13   : > { %405 = sbr.rel (%p402_p10) target bundleno = 497 (0x1f1), region = 52  ;;  %s2007_s1 = sld [smem:[#allocation7_spill]] (!%p402_p10) }
  0x14   : > { %s1421_s28 = scalar_lea.hbm (!%p402_p10), %s1999_s12, 2 }
  0x18   : > { %s484_s17 = scalar_select %p483_p11, %s1471_s24, 1  ;;  %vm542_vm0 = vcmask 261120   ;;  %v1481_v16 = vmov 32.0   ;;  %v759_v63 = vld [vmem:[%s1990_s3 + $0x18] sm:$0xff] }
  0x19   : > { %1383 = vrcp.f32 %v1481_v16  ;;  %800 = vmatpush.msra.mxu0 %v759_v63  ;;  %1311 = vmatpush.msra.mxu3 %v759_v63 }
  0x1a   : > { %s1604_s18 = sshll.u32 %s484_s17, 6 }
  0x1b   : > { %s490_s27 = scalar_lea.vmem %s2006_s0, %s1604_s18  ;;  %s1756_s17 = scalar_lea.vmem %s1995_s8, %s1604_s18 }
  0x1c   : > { %v534_v0 = vld [vmem:[%s490_s27 + $0x10] sm:$0xff]  ;;  %v533_v1 = vld [vmem:[%s490_s27 + $0x8] sm:$0xff]  ;;  %v532_v2 = vld [vmem:[%s490_s27] sm:$0xff]  ;;  %s1864_s30 = scalar_lea.vmem %s1996_s9, %s1604_s18  ;;  %s1871_s19 = scalar_lea.vmem %s1997_s10, %s1604_s18 }
  0x1d   : > { %v549_v3 = vsel %vm542_vm0, %v534_v0, 0.0  ;;  %v546_v4 = vsel %vm542_vm0, %v533_v1, 0.0  ;;  %v543_v5 = vsel %vm542_vm0, %v532_v2, 0.0  ;;  %v535_v6 = vld [vmem:[%s490_s27 + $0x18] sm:$0xff]  ;;  %v538_v8 = vld [vmem:[%s490_s27 + $0x30] sm:$0xff]  ;;  %v537_v12 = vld [vmem:[%s490_s27 + $0x28] sm:$0xff]  ;;  %s1882_s29 = scalar_lea.vmem %s1998_s11, %s1604_s18 }
  0x1e   : > { %550 = vadd.xlane.f32.xlu2 %v549_v3  ;;  %547 = vadd.xlane.f32.xlu1 %v546_v4  ;;  %v539_v7 = vld [vmem:[%s490_s27 + $0x38] sm:$0xff]  ;;  %v552_v9 = vsel %vm542_vm0, %v535_v6, 0.0  ;;  %v561_v11 = vsel %vm542_vm0, %v538_v8, 0.0  ;;  %v536_v13 = vld [vmem:[%s490_s27 + $0x20] sm:$0xff]  ;;  %v558_v14 = vsel %vm542_vm0, %v537_v12, 0.0  ;;  %v840_v3 = vld [vmem:[%s1992_s5 + $0x10] sm:$0xff] }
  0x1f   : > { %544 = vadd.xlane.f32.xlu0 %v543_v5  ;;  %v564_v10 = vsel %vm542_vm0, %v539_v7, 0.0  ;;  %v555_v15 = vsel %vm542_vm0, %v536_v13, 0.0  ;;  %v1384_v17 = vpop.eup %1383  ;;  %v1689_v4 = vld [vmem:[%s1994_s7 + $0x10] sm:$0xff]  ;;  %v757_v5 = vld [vmem:[%s1990_s3 + $0x8] sm:$0xff]  ;;  %s480_s18 = sand.u32 1, %s1463_s22  }
  0x20   : > { %v568_v18 = vmul.f32 32.0, %v1384_v17  ;;  %vm572_vm1 = vweird.f32 %v1384_v17  ;;  %s481_s14 = scalar_lea.vmem [#allocation2], %s480_s18  ;;  %s1020_s0 = scalar_lea.sflag [#allocation3], %s480_s18 }
  0x22   : > { %v569_v19 = vsub.f32 1.0, %v568_v18 }
  0x24   : > { %v570_v20 = vmul.f32 %v1384_v17, %v569_v19 }
  0x26   : > { %553 = vadd.xlane.f32.xlu2 %v552_v9  ;;  %565 = vadd.xlane.f32.xlu1 %v564_v10  ;;  %v571_v21 = vadd.f32 %v1384_v17, %v570_v20  ;;  %v756_v9 = vld [vmem:[%s1990_s3] sm:$0xff] }
  0x27   : > { %562 = vadd.xlane.f32.xlu0 %v561_v11  ;;  %v838_v10 = vld [vmem:[%s1992_s5] sm:$0xff] }
  0x28   : > { %v1618_v22 = vsel %vm572_vm1, %v1384_v17, %v571_v21  ;;  %v1713_v11 = vld [vmem:[%s1994_s7] sm:$0xff] }
  0x2e   : > { %559 = vadd.xlane.f32.xlu1 %v558_v14 }
  0x2f   : > { %556 = vadd.xlane.f32.xlu0 %v555_v15 }
  0x91   : > { %v551_v23 = vpop.xlane.xlu2 %550  ;;  %v548_v24 = vpop.xlane.xlu1 %547 }
  0x92   : > { %v575_v25 = vmul.f32 %v1618_v22, %v548_v24  ;;  %v545_v26 = vpop.xlane.xlu0 %544  ;;  %v576_v39 = vmul.f32 %v1618_v22, %v551_v23 }
  0x93   : > { %v574_v27 = vmul.f32 %v1618_v22, %v545_v26 }
  0x94   : > { %v1622_v28 = vsub.f32 %v533_v1, %v575_v25  ;;  %v1646_v46 = vsub.f32 %v534_v0, %v576_v39  ;;  %v841_v0 = vld [vmem:[%s1992_s5 + $0x18] sm:$0xff] }
  0x95   : > { %v1624_v29 = vsub.f32 %v532_v2, %v574_v27  ;;  %v1677_v1 = vld [vmem:[%s1994_s7 + $0x18] sm:$0xff]  ;;  %858 = vmatpush.msra.mxu1 %v841_v0  ;;  %v758_v2 = vld [vmem:[%s1990_s3 + $0x10] sm:$0xff] }
  0x96   : > { %v591_v30 = vmul.f32 %v1622_v28, %v1622_v28  ;;  %v592_v55 = vmul.f32 %v1646_v46, %v1646_v46  ;;  %911 = vmatpush.msra.mxu2 %v1677_v1  ;;  %801 = vmatpush.msra.mxu0 %v758_v2 }
  0x97   : > { %v590_v31 = vmul.f32 %v1624_v29, %v1624_v29  ;;  %859 = vmatpush.msra.mxu1 %v840_v3  ;;  %1312 = vmatpush.msra.mxu3 %v758_v2  ;;  %v1746_v2 = vld [vmem:[%s1989_s2] ss:$0 sm:$0xff] }
  0x98   : > { %v601_v32 = vsel %vm542_vm0, %v591_v30, 0.0  ;;  %v604_v58 = vsel %vm542_vm0, %v592_v55, 0.0  ;;  %912 = vmatpush.msra.mxu2 %v1689_v4  ;;  %802 = vmatpush.msra.mxu0 %v757_v5 }
  0x99   : > { %v554_v33 = vpop.xlane.xlu2 %553  ;;  %602 = vadd.xlane.f32.xlu1 %v601_v32  ;;  %v566_v34 = vpop.xlane.xlu1 %565  ;;  %v598_v35 = vsel %vm542_vm0, %v590_v31, 0.0  ;;  %1313 = vmatpush.msra.mxu3 %v757_v5 }
  0x9a   : > { %v577_v36 = vmul.f32 %v1618_v22, %v554_v33  ;;  %v581_v37 = vmul.f32 %v1618_v22, %v566_v34  ;;  %599 = vadd.xlane.f32.xlu2 %v598_v35  ;;  %v563_v38 = vpop.xlane.xlu0 %562  ;;  %803 = vmatpush.msra.mxu0 %v756_v9 }
  0x9b   : > { %v580_v40 = vmul.f32 %v1618_v22, %v563_v38  ;;  %1314 = vmatpush.msra.mxu3 %v756_v9 }
  0x9c   : > { %v1636_v41 = vsub.f32 %v535_v6, %v577_v36  ;;  %v1638_v42 = vsub.f32 %v539_v7, %v581_v37  ;;  %v839_v6 = vld [vmem:[%s1992_s5 + $0x8] sm:$0xff] }
  0x9d   : > { %v1640_v43 = vsub.f32 %v538_v8, %v580_v40  ;;  %v1701_v7 = vld [vmem:[%s1994_s7 + $0x8] sm:$0xff]  ;;  %860 = vmatpush.msra.mxu1 %v839_v6  ;;  %1315 = vmatpush.msrb.mxu3 %v841_v0 }
  0x9e   : > { %v593_v44 = vmul.f32 %v1636_v41, %v1636_v41  ;;  %v597_v45 = vmul.f32 %v1638_v42, %v1638_v42  ;;  %913 = vmatpush.msra.mxu2 %v1701_v7 }
  0x9f   : > { %v596_v47 = vmul.f32 %v1640_v43, %v1640_v43  ;;  %861 = vmatpush.msra.mxu1 %v838_v10  ;;  %1316 = vmatpush.msrb.mxu3 %v840_v3 }
  0xa0   : > { %v607_v48 = vsel %vm542_vm0, %v593_v44, 0.0  ;;  %v619_v49 = vsel %vm542_vm0, %v597_v45, 0.0  ;;  %914 = vmatpush.msra.mxu2 %v1713_v11 }
  0xa1   : > { %608 = vadd.xlane.f32.xlu1 %v607_v48  ;;  %v616_v50 = vsel %vm542_vm0, %v596_v47, 0.0  ;;  %v560_v51 = vpop.xlane.xlu1 %559  ;;  %1317 = vmatpush.msrb.mxu3 %v839_v6 }
  0xa2   : > { %620 = vadd.xlane.f32.xlu2 %v619_v49  ;;  %617 = vadd.xlane.f32.xlu0 %v616_v50  ;;  %v557_v52 = vpop.xlane.xlu0 %556  ;;  %v579_v54 = vmul.f32 %v1618_v22, %v560_v51 }
  0xa3   : > { %v578_v53 = vmul.f32 %v1618_v22, %v557_v52  ;;  %1318 = vmatpush.msrb.mxu3 %v838_v10 }
  0xa4   : > { %v1659_v57 = vsub.f32 %v537_v12, %v579_v54 }
  0xa5   : > { %v1657_v56 = vsub.f32 %v536_v13, %v578_v53 }
  0xa6   : > { %v595_v61 = vmul.f32 %v1659_v57, %v1659_v57 }
  0xa7   : > { %v594_v59 = vmul.f32 %v1657_v56, %v1657_v56 }
  0xa8   : > { %v613_v62 = vsel %vm542_vm0, %v595_v61, 0.0 }
  0xa9   : > { %v610_v60 = vsel %vm542_vm0, %v594_v59, 0.0 }
  0xaa   : > { %605 = vadd.xlane.f32.xlu0 %v604_v58  ;;  %611 = vadd.xlane.f32.xlu2 %v610_v60  ;;  %v1738_v58 = vld [vmem:[%s2007_s1] ss:$0 sm:$0xff] }
  0xb2   : > { %614 = vadd.xlane.f32.xlu0 %v613_v62 }
 0x10c   : > { %v603_v8 = vpop.xlane.xlu1 %602 }
 0x10d   : > { %v623_v12 = vmul.f32 %v603_v8, %v1618_v22  ;;  %v600_v13 = vpop.xlane.xlu2 %599 }
 0x10e   : > { %v622_v14 = vmul.f32 %v600_v13, %v1618_v22 }
 0x10f   : > { %v631_v15 = vadd.f32 1e-05, %v623_v12 }
 0x110   : > { %v630_v16 = vadd.f32 1e-05, %v622_v14 }
 0x111   : > { %1385 = vrsqrt.f32 %v631_v15  ;;  %vm654_vm2 = vweird.f32 %v631_v15 }
 0x112   : > { %1387 = vrsqrt.f32 %v630_v16  ;;  %vm644_vm6 = vweird.f32 %v630_v16 }
 0x114   : > { %v609_v17 = vpop.xlane.xlu1 %608 }
 0x115   : > { %v625_v18 = vmul.f32 %v609_v17, %v1618_v22  ;;  %v621_v19 = vpop.xlane.xlu2 %620  ;;  %v618_v20 = vpop.xlane.xlu0 %617 }
 0x116   : > { %v629_v21 = vmul.f32 %v621_v19, %v1618_v22  ;;  %v628_v23 = vmul.f32 %v618_v20, %v1618_v22 }
 0x117   : > { %v1386_v24 = vpop.eup %1385  ;;  %v633_v25 = vadd.f32 1e-05, %v625_v18 }
 0x118   : > { %v1388_v26 = vpop.eup %1387  ;;  %v649_v27 = vmul.f32 %v1386_v24, %v631_v15  ;;  %v1721_v30 = vadd.f32 1e-05, %v629_v21  ;;  %v1723_v31 = vadd.f32 1e-05, %v628_v23  ;;  %vm655_vm3 = vweird.f32 %v1386_v24 }
 0x119   : > { %v639_v32 = vmul.f32 %v1388_v26, %v630_v16  ;;  %1389 = vrsqrt.f32 %v633_v25  ;;  %vm645_vm4 = vweird.f32 %v1388_v26  ;;  %vm656_vm5 = vmor %vm654_vm2, %vm655_vm3  ;;  %vm674_vm8 = vweird.f32 %v633_v25 }
 0x11a   : > { %v650_v33 = vmul.f32 %v1386_v24, %v649_v27  ;;  %1391 = vrsqrt.f32 %v1721_v30  ;;  %vm646_vm7 = vmor %vm644_vm6, %vm645_vm4  ;;  %vm714_vm10 = vweird.f32 %v1721_v30  ;;  %vm704_vm15 = vweird.f32 %v1723_v31 }
 0x11b   : > { %v640_v34 = vmul.f32 %v1388_v26, %v639_v32  ;;  %1393 = vrsqrt.f32 %v1723_v31 }
 0x11c   : > { %v651_v35 = vmul.f32 0.5, %v650_v33 }
 0x11d   : > { %v641_v36 = vmul.f32 0.5, %v640_v34  ;;  %v612_v37 = vpop.xlane.xlu2 %611  ;;  %v606_v38 = vpop.xlane.xlu0 %605 }
 0x11e   : > { %v652_v39 = vsub.f32 1.5, %v651_v35  ;;  %v626_v40 = vmul.f32 %v612_v37, %v1618_v22  ;;  %v624_v44 = vmul.f32 %v606_v38, %v1618_v22 }
 0x11f   : > { %v1390_v45 = vpop.eup %1389  ;;  %v642_v47 = vsub.f32 1.5, %v641_v36 }
 0x120   : > { %v1392_v48 = vpop.eup %1391  ;;  %v653_v49 = vmul.f32 %v1386_v24, %v652_v39  ;;  %v669_v50 = vmul.f32 %v1390_v45, %v633_v25  ;;  %v1729_v51 = vadd.f32 1e-05, %v626_v40  ;;  %v1733_v55 = vadd.f32 1e-05, %v624_v44 }
 0x121   : > { %v1394_v52 = vpop.eup %1393  ;;  %v643_v53 = vmul.f32 %v1388_v26, %v642_v47  ;;  %v709_v54 = vmul.f32 %v1392_v48, %v1721_v30  ;;  %vm675_vm9 = vweird.f32 %v1390_v45  ;;  %vm715_vm12 = vweird.f32 %v1392_v48 }
 0x122   : > { %v657_v59 = vsel %vm656_vm5, %v1386_v24, %v653_v49  ;;  %v670_v60 = vmul.f32 %v1390_v45, %v669_v50  ;;  %v699_v61 = vmul.f32 %v1394_v52, %v1723_v31  ;;  %1395 = vrsqrt.f32 %v1729_v51  ;;  %vm1761_vm11 = vmor %vm674_vm8, %vm675_vm9 }
 0x123   : > { %v719_v62 = vmul.f32 %v657_v59, %v1622_v28  ;;  %v647_v63 = vsel %vm646_vm7, %v1388_v26, %v643_v53  ;;  %v710_v0 = vmul.f32 %v1392_v48, %v709_v54  ;;  %1397 = vrsqrt.f32 %v1733_v55  ;;  %vm716_vm14 = vmor %vm714_vm10, %vm715_vm12 }
 0x124   : > { %v718_v3 = vmul.f32 %v647_v63, %v1624_v29  ;;  %v671_v5 = vmul.f32 0.5, %v670_v60  ;;  %v700_v6 = vmul.f32 %v1394_v52, %v699_v61  ;;  %vm705_vm13 = vweird.f32 %v1394_v52 }
 0x125   : > { %v711_v8 = vmul.f32 0.5, %v710_v0  ;;  %v615_v28 = vpop.xlane.xlu0 %614  ;;  %v730_v9 = vmul.f32 %v1738_v58, %v719_v62  ;;  %vm706_vm1 = vmor %vm704_vm15, %vm705_vm13  ;;  %vm684_vm2 = vweird.f32 %v1729_v51  ;;  %vm664_vm6 = vweird.f32 %v1733_v55 }
 0x126   : > { %v672_v10 = vsub.f32 1.5, %v671_v5  ;;  %v701_v12 = vmul.f32 0.5, %v700_v6  ;;  %v627_v29 = vmul.f32 %v615_v28, %v1618_v22  ;;  %v729_v13 = vmul.f32 %v1738_v58, %v718_v3 }
 0x127   : > { %v712_v15 = vsub.f32 1.5, %v711_v8  ;;  %v741_v16 = vadd.f32 %v1746_v2, %v730_v9  ;;  %vm973_vm12 = vcmask 253952  }
 0x128   : > { %v673_v17 = vmul.f32 %v1390_v45, %v672_v10  ;;  %v702_v18 = vsub.f32 1.5, %v701_v12  ;;  %v1766_v19 = vadd.f32 1e-05, %v627_v29  ;;  %v740_v20 = vadd.f32 %v1746_v2, %v729_v13  ;;  %v1396_v22 = vpop.eup %1395 }
 0x129   : > { %v713_v21 = vmul.f32 %v1392_v48, %v712_v15  ;;  %749 = vst.msk [vmem:[%s1756_s17 + $0x8] sm:$0xff] %vm542_vm0, %v741_v16  ;;  %v679_v25 = vmul.f32 %v1396_v22, %v1729_v51  ;;  %v1398_v26 = vpop.eup %1397  ;;  %vm685_vm3 = vweird.f32 %v1396_v22 }
 0x12a   : > { %v677_v23 = vsel %vm1761_vm11, %v1390_v45, %v673_v17  ;;  %v703_v24 = vmul.f32 %v1394_v52, %v702_v18  ;;  %748 = vst.msk [vmem:[%s1756_s17] sm:$0xff] %vm542_vm0, %v740_v20  ;;  %1280 = vmatmul.msk.f32.vlgmr.msra.gmra.mxu0 %vm542_vm0, %v740_v20  ;;  %1399 = vrsqrt.f32 %v1766_v19  ;;  %1288 = vmatmul.msk.f32.vlgmr.msra.gmra.mxu1 %vm542_vm0, %v740_v20  ;;  %vm1794_vm4 = vmor %vm684_vm2, %vm685_vm3  ;;  %vm665_vm5 = vweird.f32 %v1398_v26 }
 0x12b   : > { %v721_v27 = vmul.f32 %v677_v23, %v1636_v41  ;;  %v717_v32 = vsel %vm716_vm14, %v1392_v48, %v713_v21  ;;  %1296 = vmatmul.msk.f32.vlgmr.msra.gmra.mxu2 %vm542_vm0, %v740_v20  ;;  %v680_v33 = vmul.f32 %v1396_v22, %v679_v25  ;;  %v659_v34 = vmul.f32 %v1398_v26, %v1733_v55  ;;  %vm666_vm7 = vmor %vm664_vm6, %vm665_vm5 }
 0x12c   : > { %v725_v30 = vmul.f32 %v717_v32, %v1638_v42  ;;  %v707_v31 = vsel %vm706_vm1, %v1394_v52, %v703_v24  ;;  %vm694_vm8 = vweird.f32 %v1766_v19  ;;  %vm829_vm11 = vcmask 64512  }
 0x12d   : > { %v724_v35 = vmul.f32 %v707_v31, %v1640_v43  ;;  %v732_v41 = vmul.f32 %v1738_v58, %v721_v27  ;;  %v681_v36 = vmul.f32 0.5, %v680_v33  ;;  %v660_v37 = vmul.f32 %v1398_v26, %v659_v34 }
 0x12e   : > { %v736_v38 = vmul.f32 %v1738_v58, %v725_v30 }
 0x12f   : > { %v735_v42 = vmul.f32 %v1738_v58, %v724_v35  ;;  %v743_v39 = vadd.f32 %v1746_v2, %v732_v41  ;;  %v682_v40 = vsub.f32 1.5, %v681_v36  ;;  %v661_v44 = vmul.f32 0.5, %v660_v37 }
 0x130   : > { %v747_v45 = vadd.f32 %v1746_v2, %v736_v38  ;;  %v1400_v43 = vpop.eup %1399 }
 0x131   : > { %v746_v48 = vadd.f32 %v1746_v2, %v735_v42  ;;  %751 = vst.msk [vmem:[%s1756_s17 + $0x18] sm:$0xff] %vm542_vm0, %v743_v39  ;;  %v683_v49 = vmul.f32 %v1396_v22, %v682_v40  ;;  %v662_v50 = vsub.f32 1.5, %v661_v44  ;;  %v689_v51 = vmul.f32 %v1400_v43, %v1766_v19 }
 0x132   : > { %1281 = vmatmul.msk.f32.gmra.mxu0 %vm542_vm0, %v741_v16  ;;  %755 = vst.msk [vmem:[%s1756_s17 + $0x38] sm:$0xff] %vm542_vm0, %v747_v45  ;;  %1289 = vmatmul.msk.f32.gmra.mxu1 %vm542_vm0, %v741_v16  ;;  %vm695_vm9 = vweird.f32 %v1400_v43 }
 0x133   : > { %754 = vst.msk [vmem:[%s1756_s17 + $0x30] sm:$0xff] %vm542_vm0, %v746_v48  ;;  %1286 = vmatmul.msk.f32.vlgmr.msra.gmra.mxu3 %vm542_vm0, %v746_v48  ;;  %v687_v52 = vsel %vm1794_vm4, %v1396_v22, %v683_v49  ;;  %v663_v53 = vmul.f32 %v1398_v26, %v662_v50  ;;  %v690_v54 = vmul.f32 %v1400_v43, %v689_v51  ;;  %vm696_vm10 = vmor %vm694_vm8, %vm695_vm9 }
 0x134   : > { %1297 = vmatmul.msk.f32.gmra.mxu2 %vm542_vm0, %v741_v16  ;;  %1319 = vmatpush.msra.mxu3 %v1677_v1  ;;  %v722_v59 = vmul.f32 %v687_v52, %v1657_v56 }
 0x135   : > { %v667_v60 = vsel %vm666_vm7, %v1398_v26, %v663_v53  ;;  %v691_v61 = vmul.f32 0.5, %v690_v54 }
 0x136   : > { %1320 = vmatpush.msra.mxu3 %v1689_v4  ;;  %v720_v62 = vmul.f32 %v667_v60, %v1646_v46  ;;  %v733_v55 = vmul.f32 %v1738_v58, %v722_v59 }
 0x137   : > { %v692_v63 = vsub.f32 1.5, %v691_v61 }
 0x138   : > { %1321 = vmatpush.msra.mxu3 %v1701_v7  ;;  %v731_v56 = vmul.f32 %v1738_v58, %v720_v62  ;;  %v744_v1 = vadd.f32 %v1746_v2, %v733_v55 }
 0x139   : > { %v693_v0 = vmul.f32 %v1400_v43, %v692_v63 }
 0x13a   : > { %1322 = vmatpush.msra.mxu3 %v1713_v11  ;;  %v742_v3 = vadd.f32 %v1746_v2, %v731_v56  ;;  %752 = vst.msk [vmem:[%s1756_s17 + $0x20] sm:$0xff] %vm542_vm0, %v744_v1 }
 0x13b   : > { %1287 = vmatmul.msk.f32.gmra.mxu3 %vm542_vm0, %v747_v45  ;;  %v697_v46 = vsel %vm696_vm10, %v1400_v43, %v693_v0 }
 0x13c   : > { %v723_v4 = vmul.f32 %v697_v46, %v1659_v57  ;;  %750 = vst.msk [vmem:[%s1756_s17 + $0x10] sm:$0xff] %vm542_vm0, %v742_v3  ;;  %1282 = vmatmul.msk.f32.gmra.mxu0 %vm542_vm0, %v742_v3  ;;  %1290 = vmatmul.msk.f32.gmra.mxu1 %vm542_vm0, %v742_v3  ;;  %v1853_v57 = vld [vmem:[%s1991_s4] ss:$0 sm:$0xff] }
 0x13d   : > { %1298 = vmatmul.msk.f32.gmra.mxu2 %vm542_vm0, %v742_v3 }
 0x13e   : > { %v734_v7 = vmul.f32 %v1738_v58, %v723_v4  ;;  %v1858_v58 = vld [vmem:[%s1993_s6] ss:$0 sm:$0xff] }
 0x140   : > { %v745_v11 = vadd.f32 %v1746_v2, %v734_v7 }
 0x142   : > { %753 = vst.msk [vmem:[%s1756_s17 + $0x28] sm:$0xff] %vm542_vm0, %v745_v11  ;;  %s1046_s17 = sshll.u32 %s481_s14, 4  ;;  %s1047_s17 = int_to_ptr.vmem [resolvable:$true] %s1046_s17 }
 0x143   : > { %1294 = vmatmul.msk.f32.vlgmr.msrb.gmra.mxu3 %vm542_vm0, %v746_v48 }
 0x144   : > { %1283 = vmatmul.msk.f32.gmra.mxu0 %vm542_vm0, %v743_v39  ;;  %1291 = vmatmul.msk.f32.gmra.mxu1 %vm542_vm0, %v743_v39 }
 0x145   : > { %1299 = vmatmul.msk.f32.gmra.mxu2 %vm542_vm0, %v743_v39 }
 0x14b   : > { %1295 = vmatmul.msk.f32.gmra.mxu3 %vm542_vm0, %v747_v45 }
 0x14c   : > { %1284 = vmatmul.msk.f32.gmra.mxu0 %vm542_vm0, %v744_v1  ;;  %1292 = vmatmul.msk.f32.gmra.mxu1 %vm542_vm0, %v744_v1 }
 0x14d   : > { %1300 = vmatmul.msk.f32.gmra.mxu2 %vm542_vm0, %v744_v1 }
 0x153   : > { %1302 = vmatmul.msk.f32.vlgmr.msra.gmra.mxu3 %vm542_vm0, %v746_v48 }
 0x154   : > { %1285 = vmatmul.msk.f32.gmra.mxu0 %vm542_vm0, %v745_v11  ;;  %1293 = vmatmul.msk.f32.gmra.mxu1 %vm542_vm0, %v745_v11 }
 0x155   : > { %1301 = vmatmul.msk.f32.gmra.mxu2 %vm542_vm0, %v745_v11 }
 0x15b   : > { %1303 = vmatmul.msk.f32.gmra.mxu3 %vm542_vm0, %v747_v45 }
 0x1a7   : > { %v805_v2 = vpop.f32.mrf.mxu0  ;;  %v863_v6 = vpop.f32.mrf.mxu1 }
 0x1a8   : > { %v806_v5 = vadd.f32 %v1853_v57, %v805_v2  ;;  %v864_v8 = vadd.f32 %v1858_v58, %v863_v6 }
 0x1aa   : > { %830 = vst.msk [vmem:[%s1864_s30] sm:$0xff] %vm829_vm11, %v806_v5 }
 0x1ab   : > { %887 = vst.msk [vmem:[%s1871_s19] sm:$0xff] %vm829_vm11, %v864_v8 }
 0x1ae   : > { %v916_v28 = vpop.f32.mrf.mxu2 }
 0x1af   : > { %940 = vst.msk [vmem:[%s1882_s29] sm:$0xff] %vm542_vm0, %v916_v28  ;;  %v808_v9 = vpop.f32.mrf.mxu0  ;;  %v866_v12 = vpop.f32.mrf.mxu1  ;;  %v948_v42 = vsel %vm542_vm0, %v916_v28, 0.0 }
 0x1b0   : > { %v809_v10 = vadd.f32 %v1853_v57, %v808_v9  ;;  %v867_v29 = vadd.f32 %v1858_v58, %v866_v12 }
 0x1b2   : > { %831 = vst.msk [vmem:[%s1864_s30 + $0x8] sm:$0xff] %vm829_vm11, %v809_v10 }
 0x1b3   : > { %888 = vst.msk [vmem:[%s1871_s19 + $0x8] sm:$0xff] %vm829_vm11, %v867_v29 }
 0x1b6   : > { %v823_v13 = vpop.f32.mrf.mxu3 }
 0x1b7   : > { %v824_v14 = vadd.f32 %v1853_v57, %v823_v13  ;;  %v919_v15 = vpop.f32.mrf.mxu2 }
 0x1b8   : > { %941 = vst.msk [vmem:[%s1882_s29 + $0x8] sm:$0xff] %vm542_vm0, %v919_v15  ;;  %v949_v37 = vsel %vm542_vm0, %v919_v15, 0.0 }
 0x1b9   : > { %836 = vst.msk [vmem:[%s1864_s30 + $0x30] sm:$0xff] %vm829_vm11, %v824_v14  ;;  %v811_v16 = vpop.f32.mrf.mxu0  ;;  %v869_v17 = vpop.f32.mrf.mxu1  ;;  %v950_v45 = vadd.f32 %v949_v37, %v948_v42 }
 0x1ba   : > { %v812_v18 = vadd.f32 %v1853_v57, %v811_v16  ;;  %v870_v19 = vadd.f32 %v1858_v58, %v869_v17 }
 0x1bc   : > { %832 = vst.msk [vmem:[%s1864_s30 + $0x10] sm:$0xff] %vm829_vm11, %v812_v18 }
 0x1bd   : > { %889 = vst.msk [vmem:[%s1871_s19 + $0x10] sm:$0xff] %vm829_vm11, %v870_v19 }
 0x1be   : > { %v826_v20 = vpop.f32.mrf.mxu3 }
 0x1bf   : > { %v827_v22 = vadd.f32 %v1853_v57, %v826_v20 }
 0x1c0   : > { %v922_v21 = vpop.f32.mrf.mxu2 }
 0x1c1   : > { %837 = vst.msk [vmem:[%s1864_s30 + $0x38] sm:$0xff] %vm829_vm11, %v827_v22  ;;  %v814_v23 = vpop.f32.mrf.mxu0  ;;  %v872_v24 = vpop.f32.mrf.mxu1  ;;  %v951_v39 = vsel %vm542_vm0, %v922_v21, 0.0 }
 0x1c2   : > { %942 = vst.msk [vmem:[%s1882_s29 + $0x10] sm:$0xff] %vm542_vm0, %v922_v21  ;;  %v815_v25 = vadd.f32 %v1853_v57, %v814_v23  ;;  %v873_v26 = vadd.f32 %v1858_v58, %v872_v24  ;;  %v952_v49 = vadd.f32 %v951_v39, %v950_v45 }
 0x1c4   : > { %833 = vst.msk [vmem:[%s1864_s30 + $0x18] sm:$0xff] %vm829_vm11, %v815_v25 }
 0x1c5   : > { %890 = vst.msk [vmem:[%s1871_s19 + $0x18] sm:$0xff] %vm829_vm11, %v873_v26 }
 0x1c6   : > { %v881_v27 = vpop.f32.mrf.mxu3 }
 0x1c7   : > { %v882_v32 = vadd.f32 %v1858_v58, %v881_v27 }
 0x1c8   : > { %v925_v30 = vpop.f32.mrf.mxu2 }
 0x1c9   : > { %893 = vst.msk [vmem:[%s1871_s19 + $0x30] sm:$0xff] %vm829_vm11, %v882_v32  ;;  %v817_v31 = vpop.f32.mrf.mxu0  ;;  %v875_v33 = vpop.f32.mrf.mxu1  ;;  %v953_v48 = vsel %vm542_vm0, %v925_v30, 0.0 }
 0x1ca   : > { %943 = vst.msk [vmem:[%s1882_s29 + $0x18] sm:$0xff] %vm542_vm0, %v925_v30  ;;  %v818_v34 = vadd.f32 %v1853_v57, %v817_v31  ;;  %v876_v35 = vadd.f32 %v1858_v58, %v875_v33  ;;  %v954_v52 = vadd.f32 %v953_v48, %v952_v49 }
 0x1cc   : > { %834 = vst.msk [vmem:[%s1864_s30 + $0x20] sm:$0xff] %vm829_vm11, %v818_v34 }
 0x1cd   : > { %891 = vst.msk [vmem:[%s1871_s19 + $0x20] sm:$0xff] %vm829_vm11, %v876_v35 }
 0x1ce   : > { %v884_v41 = vpop.f32.mrf.mxu3 }
 0x1cf   : > { %v885_v36 = vadd.f32 %v1858_v58, %v884_v41 }
 0x1d0   : > { %v928_v38 = vpop.f32.mrf.mxu2 }
 0x1d1   : > { %894 = vst.msk [vmem:[%s1871_s19 + $0x38] sm:$0xff] %vm829_vm11, %v885_v36  ;;  %v820_v40 = vpop.f32.mrf.mxu0  ;;  %v878_v44 = vpop.f32.mrf.mxu1  ;;  %v955_v50 = vsel %vm542_vm0, %v928_v38, 0.0 }
 0x1d2   : > { %944 = vst.msk [vmem:[%s1882_s29 + $0x20] sm:$0xff] %vm542_vm0, %v928_v38  ;;  %v821_v43 = vadd.f32 %v1853_v57, %v820_v40  ;;  %v879_v47 = vadd.f32 %v1858_v58, %v878_v44  ;;  %v956_v53 = vadd.f32 %v955_v50, %v954_v52 }
 0x1d4   : > { %835 = vst.msk [vmem:[%s1864_s30 + $0x28] sm:$0xff] %vm829_vm11, %v821_v43  ;;  %s1044_s30 = scalar_lea.hbm %s1999_s12, %s1471_s24 }
 0x1d5   : > { %892 = vst.msk [vmem:[%s1871_s19 + $0x28] sm:$0xff] %vm829_vm11, %v879_v47  ;;  %s1048_s19 = sshll.u32 %s1044_s30, 4  ;;  %s1049_s19 = int_to_ptr.hbm [resolvable:$true] %s1048_s19 }
 0x1d6   : > { %v934_v51 = vpop.f32.mrf.mxu3  ;;  %s1415_s20 = sshra.s32 %s1049_s19, 4  ;;  %s1416_s20 = int_to_ptr.hbm [resolvable:$true] %s1415_s20 }
 0x1d7   : > { %946 = vst.msk [vmem:[%s1882_s29 + $0x30] sm:$0xff] %vm542_vm0, %v934_v51  ;;  %v959_v61 = vsel %vm542_vm0, %v934_v51, 0.0  ;;  %p1422_p1 = scmp.lt.s32.totalorder %s1416_s20, %s1999_s12 }
 0x1d8   : > { %v931_v54 = vpop.f32.mrf.mxu2 }
 0x1d9   : > { %945 = vst.msk [vmem:[%s1882_s29 + $0x28] sm:$0xff] %vm542_vm0, %v931_v54  ;;  %v957_v59 = vsel %vm542_vm0, %v931_v54, 0.0 }
 0x1da   : > { %v958_v60 = vadd.f32 %v957_v59, %v956_v53 }
 0x1dc   : > { %v960_v62 = vadd.f32 %v959_v61, %v958_v60 }
 0x1de   : > { %v937_v55 = vpop.f32.mrf.mxu3 }
 0x1df   : > { %947 = vst.msk [vmem:[%s1882_s29 + $0x38] sm:$0xff] %vm542_vm0, %v937_v55  ;;  %v961_v63 = vsel %vm542_vm0, %v937_v55, 0.0  ;;  %s1417_s29 = scalar_lea.hbm %s1416_s20, 1 }
 0x1e0   : > { %v962_v56 = vadd.f32 %v961_v63, %v960_v62  ;;  %p1418_p12 = scmp.ne.s32.totalorder %s1416_s20, %s1417_s29  ;;  %p1423_p2 = scmp.lt.s32.totalorder %s1421_s28, %s1417_s29 }
 0x1e2   : > { %v963_v1 = vrot.slane %v962_v56, 4  ;;  %p1419_p13 = pnand %p1418_p12, %p1587_p4  ;;  %p1424_p3 = por %p1423_p2, %p1422_p1 }
 0x1e4   : > { %v964_v0 = vadd.f32 %v963_v1, %v962_v56  ;;  %p1420_p0 = pneg %p1419_p13 }
 0x1e6   : > { %v965_v3 = vrot.slane %v964_v0, 2  ;;  %p1425_p5 = pnand %p1424_p3, %p1420_p0 }
 0x1e8   : > { %v966_v46 = vadd.f32 %v965_v3, %v964_v0 }
 0x1ea   : > { %v967_v4 = vrot.slane %v966_v46, 1 }
 0x1ec   : > { %v968_v7 = vadd.f32 %v967_v4, %v966_v46 }
 0x1ee   : > { %974 = vst.msk [vmem:[%s481_s14] sm:$0x1] %vm973_vm12, %v968_v7 }
 0x1ef   : > { %1428 = shalt.err (!%p1425_p5)
}
 0x1f0   : > { %1323 = dma.vmem_to_hbm [thread:$0]  (%p1587_p4), %s1047_s17, 16, %s1049_s19, %s1020_s0  }
 0x1f1 PF: > { %p1329_p6 = scmp.ge.s32.totalorder %s1479_s26, 2  ;;  %s1108_s18 = sand.u32 1, %s1459_s21  }
 0x1f2   : > { %s1109_s14 = scalar_lea.sflag [#allocation3], %s1108_s18 }
 0x1f3   : > { %p1326_p7 = pnand %p1329_p6, %p1594_p8 }
 0x1f5   : > { %p1327_p9 = pneg %p1326_p7 }
 0x1f7   : > { %1454 = dma.done.wait (%p1327_p9), %s1109_s14, 16  }
 0x1f8   : > { %1456 = vsyncadd (%p1327_p9), %s1109_s14, 4294967280  ;;  %s26_s26 = sadd.s32 1, %s1479_s26   ;;  %s2012_s1 = sld [smem:[#allocation5_spill]] }
 0x1f9   : > { %p23_p10 = scmp.ge.s32.totalorder %s26_s26, 4   ;;  %s2013_s21 = smov %s1463_s22 }
 0x1fa   : > { %s2014_s22 = smov %s1467_s23  ;;  %s2015_s23 = smov %s1600_s16 }
 0x1fb   : > { %s2016_s24 = smov %s1475_s25  ;;  %25 = sbr.rel (!%p23_p10) target bundleno = 7 (0x7), region = 143 }
 0x1fe   : > { %s2017_s25 = smov %s2012_s1 }
 0x200   :  { %1114 = vsyncpa [#allocation3], 1 }
 0x201   :  { %1116 = vsyncpa [#allocation3 + $0x1], 1 }

</bundles_post_ra>
